<compile_context>
chip_gen: v6e
topology: v6e:2x2x1
jax: 0.10.0
libtpu: 0.0.40
codegen_flags: <defaults>
</compile_context>

<pallas_src>
import functools

import jax
import jax.numpy as jnp
from jax.experimental import pallas as pl
from jax.experimental.pallas import tpu as pltpu


_MAX_TILE = 512
_TILE_CANDIDATES = (512, 384, 256, 128)


def _round_up(x, m):
    return ((x + m - 1) // m) * m


def _pick_tile(dim, candidates=_TILE_CANDIDATES):
    """Pick the tile size minimizing padding; ties go to the larger tile."""
    best_t, best_pad = None, None
    for t in candidates:
        pad = (-dim) % t
        if best_pad is None or pad < best_pad:
            best_t, best_pad = t, pad
    return best_t


def _choose_m(m):
    """Return (tm, padded_m).  Small M: one full-dim block (no pad/slice).
    Larger M: >=2 blocks (v7x megacore), 16-aligned (bf16 row pairs), <=512."""
    if m <= 128:
        return m, m
    n_blocks = max(2, -(-m // _MAX_TILE))
    tm = min(_MAX_TILE, _round_up(-(-m // n_blocks), 16))
    return tm, _round_up(m, tm)


def _choose_k(k):
    """Return (tk, padded_k)."""
    if k <= _MAX_TILE:
        return k, k                      # full-dim block, zero K padding
    tk = _pick_tile(k)
    return tk, _round_up(k, tk)


def _choose_n(n):
    """Return (tn, padded_n).  Skinny-N fast path: one full-dim block
    (legal via the 'block equals full array dim' exception) -> no N pad,
    no output slice."""
    if n <= _MAX_TILE:
        return n, n
    tn = _pick_tile(n)
    return tn, _round_up(n, tn)


def _expertness_kernel(x_ref, w_ref, b_ref, o_ref):
    """One (tm, tn) output tile; grid axis 2 iterates over K tiles."""
    kidx = pl.program_id(2)

    @pl.when(kidx == 0)
    def _():
        # o_ref is the resident f32 accumulator (its index_map ignores k);
        # seed it with the broadcast bias so the epilogue is just sigmoid.
        o_ref[...] = jnp.broadcast_to(b_ref[...], o_ref.shape)

    # bf16 x bf16 -> f32 MXU accumulation, directly into the output block.
    o_ref[...] += jnp.dot(x_ref[...].astype(jnp.bfloat16), w_ref[...],
                          preferred_element_type=jnp.float32)

    @pl.when(kidx == pl.num_programs(2) - 1)
    def _():
        o_ref[...] = jax.nn.sigmoid(o_ref[...])


@functools.lru_cache(maxsize=None)
def _expertness_call(mp, kp, np_, tm, tk, tn, x_dtype_name):
    del x_dtype_name  # cache key only
    grid = (mp // tm, np_ // tn, kp // tk)
    return pl.pallas_call(
        _expertness_kernel,
        out_shape=jax.ShapeDtypeStruct((mp, np_), jnp.float32),
        grid_spec=pltpu.PrefetchScalarGridSpec(
            num_scalar_prefetch=0,
            grid=grid,
            in_specs=[
                pl.BlockSpec((tm, tk), lambda i, j, k: (i, k)),   # x tile
                pl.BlockSpec((tk, tn), lambda i, j, k: (k, j)),   # W tile
                pl.BlockSpec((1, tn), lambda i, j, k: (0, j)),    # bias row
            ],
            out_specs=pl.BlockSpec((tm, tn), lambda i, j, k: (i, j)),
        ),
        compiler_params=pltpu.CompilerParams(
            dimension_semantics=("parallel", "parallel", "arbitrary")),
    )


def init_expertness(key, in_features, out_features):
    """torch.nn.Linear-style init: U(-1/sqrt(in), 1/sqrt(in))."""
    kw, kb = jax.random.split(key)
    bound = float(1.0 / (in_features ** 0.5))
    w = jax.random.uniform(kw, (in_features, out_features), jnp.float32,
                           -bound, bound)
    b = jax.random.uniform(kb, (out_features,), jnp.float32, -bound, bound)
    return {"w": w, "b": b}


def prepare_expertness(params):
    """One-time prep: cast W to bf16 (then pad, if needed) and pad the bias
    row, so per-call work only touches x."""
    w = params["w"]
    b = params["b"]
    k, n = w.shape
    tk, kp = _choose_k(k)
    tn, np_ = _choose_n(n)

    wp = w.astype(jnp.bfloat16)
    if kp != k or np_ != n:
        wp = jnp.pad(wp, ((0, kp - k), (0, np_ - n)))   # pad in bf16, not f32
    bp = b.reshape(1, n).astype(jnp.float32)
    if np_ != n:
        bp = jnp.pad(bp, ((0, 0), (0, np_ - n)))

    return {"wp": wp, "bp": bp, "k": k, "n": n,
            "tk": tk, "kp": kp, "tn": tn, "np": np_}


def expertness_forward(prepared, feature_map):
    """sigmoid(feature_map @ W + b) with pre-prepared (padded/cast) weights."""
    x = feature_map
    m, k = x.shape
    assert k == prepared["k"], "in_features mismatch"
    tk, kp = prepared["tk"], prepared["kp"]
    tn, np_ = prepared["tn"], prepared["np"]
    n = prepared["n"]
    tm, mp = _choose_m(m)

    multi_n = (np_ // tn) > 1
    xp = x
    if multi_n:
        # x is re-read N/tn times: halve that HBM traffic by casting to bf16
        # first (so any padding below is also written in bf16).
        xp = xp.astype(jnp.bfloat16)
    if mp != m or kp != k:
        xp = jnp.pad(xp, ((0, mp - m), (0, kp - k)))
    # Single-N-tile path: x goes in uncast (f32); the bf16 cast happens on the
    # VPU inside the kernel, hidden under DMA/MXU.

    out = _expertness_call(mp, kp, np_, tm, tk, tn,
                           jnp.dtype(xp.dtype).name)(xp, prepared["wp"],
                                                     prepared["bp"])
    if mp != m or np_ != n:
        out = out[:m, :n]
    return out


if __name__ == "__main__":
    key = jax.random.PRNGKey(0)
    k1, k2, k3, k4, k5, k6 = jax.random.split(key, 6)

    # Case 1: the module's intended tiny use (batch=2, in=32, out=16).
    # Full-dim blocks everywhere: no padding, no slice, no wrapper cast of x.
    params = init_expertness(k1, 32, 16)
    prep = prepare_expertness(params)
    feature_map = jax.random.normal(k2, (2, 32), jnp.float32)
    out = jax.block_until_ready(expertness_forward(prep, feature_map))
    ref = jax.nn.sigmoid(feature_map @ params["w"] + params["b"])
    assert out.shape == (2, 16)
    assert bool(jnp.all(jnp.isfinite(out)))
    assert bool(jnp.all((out >= 0.0) & (out <= 1.0)))
    assert bool(jnp.allclose(out, ref, atol=2e-2, rtol=2e-2))

    # Case 2: unaligned shapes, single-tile full-dim blocks (still no padding).
    params2 = init_expertness(k3, 300, 200)
    prep2 = prepare_expertness(params2)
    x2 = jax.random.normal(k4, (40, 300), jnp.float32)
    out2 = jax.block_until_ready(expertness_forward(prep2, x2))
    ref2 = jax.nn.sigmoid(x2 @ params2["w"] + params2["b"])
    assert out2.shape == (40, 200)
    assert bool(jnp.allclose(out2, ref2, atol=2e-2, rtol=2e-2))

    # Case 3: multi-block grid path (2 M blocks + 5 K steps + M pad/slice).
    params3 = init_expertness(k5, 640, 96)
    prep3 = prepare_expertness(params3)
    x3 = jax.random.normal(k6, (300, 640), jnp.float32)
    out3 = jax.block_until_ready(expertness_forward(prep3, x3))
    ref3 = jax.nn.sigmoid(x3 @ params3["w"] + params3["b"])
    assert out3.shape == (300, 96)
    assert bool(jnp.allclose(out3, ref3, atol=2e-2, rtol=2e-2))

    print("KERNEL_OK")
</pallas_src>

<mosaic_0001>
module attributes {stable_mosaic.version = 11 : i64} {
  func.func @_expertness_kernel(%arg0: i32, %arg1: i32, %arg2: i32, %arg3: memref<2x32xf32, #tpu.memory_space<vmem>>, %arg4: memref<32x16xbf16, #tpu.memory_space<vmem>>, %arg5: memref<1x16xf32, #tpu.memory_space<vmem>>, %arg6: memref<2x16xf32, #tpu.memory_space<vmem>>) attributes {dimension_semantics = [#tpu.dimension_semantics<parallel>, #tpu.dimension_semantics<parallel>, #tpu.dimension_semantics<arbitrary>], iteration_bounds = array<i64: 1, 1, 1>, scalar_prefetch = 0 : i64, scratch_operands = 0 : i64, tpu.core_type = #tpu.core_type<tc>, window_params = [{transform_indices = @transform_0, window_bounds = array<i64: 2, 32>}, {transform_indices = @transform_1, window_bounds = array<i64: 32, 16>}, {transform_indices = @transform_2, window_bounds = array<i64: 1, 16>}, {transform_indices = @transform_3, window_bounds = array<i64: 2, 16>}]} {
    %c0_i32 = arith.constant 0 : i32
    %0 = arith.cmpi eq, %arg2, %c0_i32 : i32
    %1 = arith.extui %0 : i1 to i32
    %c0_i32_0 = arith.constant 0 : i32
    %2 = arith.cmpi ne, %1, %c0_i32_0 : i32
    scf.if %2 {
      %c0_10 = arith.constant 0 : index
      %c0_11 = arith.constant 0 : index
      %13 = vector.load %arg5[%c0_10, %c0_11] : memref<1x16xf32, #tpu.memory_space<vmem>>, vector<1x16xf32>
      %14 = vector.shape_cast %13 : vector<1x16xf32> to vector<1x16xf32>
      %15 = vector.broadcast %14 : vector<1x16xf32> to vector<2x16xf32>
      %c0_12 = arith.constant 0 : index
      %c0_13 = arith.constant 0 : index
      %16 = vector.load %arg6[%c0_12, %c0_13] : memref<2x16xf32, #tpu.memory_space<vmem>>, vector<2x16xf32>
      tpu.vector_store %arg6[%c0_12, %c0_13], %15 {strides = array<i32>} : memref<2x16xf32, #tpu.memory_space<vmem>>, vector<2x16xf32>,
    } else {
    }
    %c0 = arith.constant 0 : index
    %c0_1 = arith.constant 0 : index
    %3 = vector.load %arg6[%c0, %c0_1] : memref<2x16xf32, #tpu.memory_space<vmem>>, vector<2x16xf32>
    %c0_2 = arith.constant 0 : index
    %c0_3 = arith.constant 0 : index
    %4 = vector.load %arg3[%c0_2, %c0_3] : memref<2x32xf32, #tpu.memory_space<vmem>>, vector<2x32xf32>
    %5 = arith.truncf %4 : vector<2x32xf32> to vector<2x32xbf16>
    %c0_4 = arith.constant 0 : index
    %c0_5 = arith.constant 0 : index
    %6 = vector.load %arg4[%c0_4, %c0_5] : memref<32x16xbf16, #tpu.memory_space<vmem>>, vector<32x16xbf16>
    %cst = arith.constant dense<0.000000e+00> : vector<2x16xf32>
    %7 = tpu.matmul %5, %6, %cst {dimension_numbers = #tpu.dot_dimension_numbers<[1], [0], [0], [1], [0, 0, 1, 1], [], []>} : vector<2x32xbf16>, vector<32x16xbf16>, vector<2x16xf32> -> vector<2x16xf32>
    %8 = arith.addf %3, %7 : vector<2x16xf32>
    %c0_6 = arith.constant 0 : index
    %c0_7 = arith.constant 0 : index
    %9 = vector.load %arg6[%c0_6, %c0_7] : memref<2x16xf32, #tpu.memory_space<vmem>>, vector<2x16xf32>
    tpu.vector_store %arg6[%c0_6, %c0_7], %8 {strides = array<i32>} : memref<2x16xf32, #tpu.memory_space<vmem>>, vector<2x16xf32>,
    %c0_i32_8 = arith.constant 0 : i32
    %10 = arith.cmpi eq, %arg2, %c0_i32_8 : i32
    %11 = arith.extui %10 : i1 to i32
    %c0_i32_9 = arith.constant 0 : i32
    %12 = arith.cmpi ne, %11, %c0_i32_9 : i32
    scf.if %12 {
      %c0_10 = arith.constant 0 : index
      %c0_11 = arith.constant 0 : index
      %13 = vector.load %arg6[%c0_10, %c0_11] : memref<2x16xf32, #tpu.memory_space<vmem>>, vector<2x16xf32>
      %14 = arith.negf %13 : vector<2x16xf32>
      %15 = math.exp %14 : vector<2x16xf32>
      %cst_12 = arith.constant 1.000000e+00 : f32
      %16 = vector.broadcast %cst_12 : f32 to vector<2x16xf32>
      %17 = arith.addf %16, %15 : vector<2x16xf32>
      %18 = arith.divf %16, %17 : vector<2x16xf32>
      %c0_13 = arith.constant 0 : index
      %c0_14 = arith.constant 0 : index
      %19 = vector.load %arg6[%c0_13, %c0_14] : memref<2x16xf32, #tpu.memory_space<vmem>>, vector<2x16xf32>
      tpu.vector_store %arg6[%c0_13, %c0_14], %18 {strides = array<i32>} : memref<2x16xf32, #tpu.memory_space<vmem>>, vector<2x16xf32>,
    } else {
    }
    return
  }
  func.func @transform_0(%arg0: i32, %arg1: i32, %arg2: i32) -> (i32, i32) {
    %c0_i32 = arith.constant 0 : i32
    return %arg0, %arg2 : i32, i32
  }
  func.func @transform_1(%arg0: i32, %arg1: i32, %arg2: i32) -> (i32, i32) {
    %c0_i32 = arith.constant 0 : i32
    return %arg2, %arg1 : i32, i32
  }
  func.func @transform_2(%arg0: i32, %arg1: i32, %arg2: i32) -> (i32, i32) {
    %c0_i32 = arith.constant 0 : i32
    %c0_i32_0 = arith.constant 0 : i32
    return %c0_i32, %arg1 : i32, i32
  }
  func.func @transform_3(%arg0: i32, %arg1: i32, %arg2: i32) -> (i32, i32) {
    %c0_i32 = arith.constant 0 : i32
    return %arg0, %arg1 : i32, i32
  }
}

</mosaic_0001>

<bundles_post_ra>
// kernel: tpu_custom_call.1
= control target key start
LH: loop header
LB: loop body
LE: loop exit
PB: predicated region body
PF: predicated region fallthrough
CT: control target
= control target key end

     0   :  { %v167_v1 = vmov 0.0   ;;  %vm168_vm0 = vmmov 0   ;;  %vm27_vm1 = vcmask 123904   ;;  %s208_s0 = inlined_call_operand.vmem [shape: f32[2,32], index: 0, kind: input, shape index: {}]   ;;  %s209_s1 = inlined_call_operand.vmem [shape: bf16[32,16], index: 1, kind: input, shape index: {}]   ;;  %s210_s2 = inlined_call_operand.vmem [shape: f32[1,16], index: 2, kind: input, shape index: {}]   ;;  %s211_s3 = inlined_call_operand.hbm [shape: f32[2,16], index: 3, kind: output, shape index: {}]  }
   0x1   :  { %v139_v0 = vld [vmem:[%s209_s1 + $0x8] sm:$0xff]   ;;  %128 = vmatprep.subr.bf16.mxu0 %v167_v1  ;;  %v140_v2 = vld [vmem:[%s209_s1] sm:$0xff]   ;;  %132 = vmatprep.mubr.msk.bf16.mxu0 %vm168_vm0, %v167_v1 }
   0x2   :  { %129 = vmatpush3.bf16.msra.mxu0 %v139_v0  ;;  %v30_v3 = vld [vmem:[%s208_s0] sm:$0x3] }
   0x3   :  { %v120_v4 = vld [vmem:[%s210_s2] ss:$0 sm:$0xff]  ;;  %130 = vmatprep.subr.bf16.mxu0 %v167_v1 }
   0x4   :  { %28 = vst.msk [vmem:[#allocation2] sm:$0x3] %vm27_vm1, %v120_v4 }
   0x5   :  { %8 = vsyncpa [#allocation3], 0  ;;  %v31_v5 = vpack.c.bf16 %v30_v3, %v30_v3  ;;  %vm48_vm2 = vcmask 261120   ;;  %s169_s0 = smov [#allocation2]  }
   0x6   :  { %131 = vmatpush3.bf16.msra.mxu0 %v140_v2  ;;  %s112_s1 = sshll.u32 %s169_s0, 4  ;;  %s113_s1 = int_to_ptr.vmem [resolvable:$true] %s112_s1 }
   0x7   :  { %s145_s2 = scalar_lea.vmem %s113_s1, 32  ;;  %p150_p1 = scmp.lt.s32.totalorder %s113_s1, %s113_s1 }
   0x8   :  { %p146_p0 = scmp.ne.s32.totalorder %s113_s1, %s145_s2  ;;  %p151_p2 = scmp.lt.s32.totalorder %s145_s2, %s145_s2 }
   0x9   :  { %133 = vmatmul.mubr.msk.bf16.vlgmr.msra.gmra.mxu0 %vm48_vm2, %v31_v5 }
   0xa   :  { %p152_p3 = por %p151_p2, %p150_p1 }
   0xb   :  { %v29_v6 = vld [vmem:[#allocation2] sm:$0x3] }
   0xc   :  { %p153_p4 = pnand %p152_p3, %p146_p0 }
  0xc9   :  { %v86_v7 = vpop.f32.mrf.mxu0 }
  0xca   :  { %v92_v8 = vadd.f32 %v86_v7, %v29_v6 }
  0xcb   :  { %v134_v9 = vpop.f32.mrf.mxu0 }
  0xcc   :  { %94 = vst.msk [vmem:[#allocation2] sm:$0x3] %vm27_vm1, %v92_v8 }
  0xcd   :  { %v89_v10 = vpop.f32.mrf.mxu0 }
  0xcf   :  { %v135_v11 = vpop.f32.mrf.mxu0 }
  0xd3   :  { %v98_v12 = vld [vmem:[#allocation2] sm:$0x3] }
  0xd4   :  { %v124_v13 = vmul.f32 -1.442695, %v98_v12 }
  0xd6   :  { %141 = vpow2.f32 %v124_v13 }
  0xe3   :  { %v142_v14 = vpop.eup %141 }
  0xe4   :  { %v102_v15 = vadd.f32 1.0, %v142_v14 }
  0xe6   :  { %143 = vrcp.f32 %v102_v15 }
  0xf3   :  { %v144_v16 = vpop.eup %143 }
  0xf4   :  { %105 = vst.msk [vmem:[#allocation2] sm:$0x3] %vm27_vm1, %v144_v16 }
  0xf5   :  { %156 = shalt.err (!%p153_p4)
}
  0xf6   :  { %115 = dma.vmem_to_hbm [thread:$0]  %s113_s1, 32, %s211_s3, [#allocation3]  }
  0xf7   :  { %165 = dma.done.wait [#allocation3], 32  }
  0xf8   :  { %166 = vsyncadd [#allocation3], 4294967264 }
  0xf9   :  { %119 = vsyncpa [#allocation3], 1 }

</bundles_post_ra>
